<compile_context>
chip_gen: v5e
topology: v5e:2x2
jax: 0.10.0
libtpu: 0.0.40
codegen_flags: <defaults>
</compile_context>

<pallas_src>
import functools

import jax
import jax.numpy as jnp
from jax.experimental import pallas as pl
from jax.experimental.pallas import tpu as pltpu

LANES = 128
SUBLANES = 8
MAX_ROW_TILE = 512  # (512, 128) f32 tile = 256 KiB per input buffer


# ----------------------------------------------------------------------------
# Kernel: accumulate sum(|a - b|) into an (8, 128) vector accumulator that
# lives in the output block (resident across the inner "arbitrary" grid axis).
# Grid = (num_shards, blocks_per_shard); each shard owns its own output block.
# ----------------------------------------------------------------------------
def _l1_sum_kernel(a_ref, b_ref, o_ref, *, rows, row_tile, blocks_per_shard,
                   needs_mask):
    s = pl.program_id(0)  # shard (parallel axis; 2 TCs on v7x)
    i = pl.program_id(1)  # row-tile within shard (reduction axis)

    @pl.when(i == 0)
    def _():
        o_ref[...] = jnp.zeros_like(o_ref)

    diff = jnp.abs(a_ref[...].astype(jnp.float32)
                   - b_ref[...].astype(jnp.float32))

    if needs_mask:
        # Zero out rows that fall past the end of the (rows, 128) slab
        # (partial / clamped tail tiles hold unspecified data).
        row_in_tile = jax.lax.broadcasted_iota(jnp.int32, diff.shape, 0)
        global_row = (s * blocks_per_shard + i) * row_tile + row_in_tile
        diff = jnp.where(global_row < rows, diff, 0.0)

    # VPU-only partial reduction of the (row_tile, 128) tile to (8, 128).
    o_ref[...] += jnp.sum(diff.reshape(row_tile // SUBLANES, SUBLANES, LANES),
                          axis=0)


def _crop_to_identical_size(a: jax.Array, b: jax.Array):
    """Crop both [B, I, X, Y, Z] tensors to the min common X, Y, Z extents."""
    if a.ndim != b.ndim:
        raise RuntimeError("Tensors must have identical ndim")
    x = min(a.shape[2], b.shape[2])
    y = min(a.shape[3], b.shape[3])
    z = min(a.shape[4], b.shape[4])
    return a[:, :, :x, :y, :z], b[:, :, :x, :y, :z]


def l1_loss(predicted: jax.Array, ground_truth: jax.Array) -> jax.Array:
    """Mean L1 distance of two [B, I, X, Y, Z] arrays (scalar float32)."""
    a, b = _crop_to_identical_size(predicted, ground_truth)
    n_true = a.size  # true element count (for the mean)

    # Flatten in the native dtype (cast to f32 happens inside the kernel).
    a_flat = a.reshape(-1)
    b_flat = b.reshape(-1)

    # Minimal zero-pad to a multiple of 8*128 so the data forms a lane-dense
    # (rows, 128) slab with rows % 8 == 0. Skipped entirely when not needed.
    chunk = SUBLANES * LANES
    padded = ((n_true + chunk - 1) // chunk) * chunk
    if padded != n_true:
        a_flat = jnp.pad(a_flat, (0, padded - n_true))
        b_flat = jnp.pad(b_flat, (0, padded - n_true))

    rows = padded // LANES
    a2 = a_flat.reshape(rows, LANES)
    b2 = b_flat.reshape(rows, LANES)

    row_tile = min(MAX_ROW_TILE, rows)                    # multiple of 8
    num_blocks = (rows + row_tile - 1) // row_tile
    num_shards = 2 if num_blocks >= 2 else 1              # v7x: 2 TensorCores
    blocks_per_shard = (num_blocks + num_shards - 1) // num_shards
    # True if any tile extends past the end of the slab (partial tail tile or
    # a clamped duplicate tile on the last shard).
    needs_mask = num_shards * blocks_per_shard * row_tile > rows
    clamp_blocks = num_shards * blocks_per_shard > num_blocks

    def in_map(s, i):
        blk = s * blocks_per_shard + i
        if clamp_blocks:
            blk = jnp.minimum(blk, num_blocks - 1)  # keep DMA in bounds
        return (blk, 0)

    kernel = functools.partial(
        _l1_sum_kernel,
        rows=rows,
        row_tile=row_tile,
        blocks_per_shard=blocks_per_shard,
        needs_mask=needs_mask,
    )

    partials = pl.pallas_call(
        kernel,
        out_shape=jax.ShapeDtypeStruct((num_shards * SUBLANES, LANES),
                                       jnp.float32),
        grid_spec=pltpu.PrefetchScalarGridSpec(
            num_scalar_prefetch=0,
            grid=(num_shards, blocks_per_shard),
            in_specs=[
                pl.BlockSpec((row_tile, LANES), in_map),
                pl.BlockSpec((row_tile, LANES), in_map),
            ],
            out_specs=pl.BlockSpec((SUBLANES, LANES), lambda s, i: (s, 0)),
        ),
        compiler_params=pltpu.CompilerParams(
            dimension_semantics=("parallel", "arbitrary"),
        ),
    )(a2, b2)

    # Final tiny cross-lane reduce + mean over the TRUE element count.
    return (jnp.sum(partials) / jnp.float32(n_true)).astype(jnp.float32)


if __name__ == "__main__":
    key = jax.random.PRNGKey(0)
    k1, k2, k3, k4 = jax.random.split(key, 4)

    # Test 1: small [B, I, X, Y, Z] inputs with mismatched spatial extents so
    # the crop_to_identical_size path is exercised (cropped to [2, 4, 8, 9, 8]).
    predicted = jax.random.uniform(k1, (2, 4, 10, 9, 8), dtype=jnp.float32)
    ground_truth = jax.random.uniform(k2, (2, 4, 8, 10, 9), dtype=jnp.float32)

    out = l1_loss(predicted, ground_truth)
    out = jax.block_until_ready(out)

    a, b = _crop_to_identical_size(predicted, ground_truth)
    ref = jnp.mean(jnp.abs(a - b))
    assert jnp.allclose(out, ref, rtol=1e-5, atol=1e-6), (out, ref)

    # Test 2: slightly larger inputs that exercise the multi-tile path
    # (two row tiles, two shards, masked partial tail tile).
    p2 = jax.random.uniform(k3, (2, 4, 25, 24, 26), dtype=jnp.float32)
    g2 = jax.random.uniform(k4, (2, 4, 24, 26, 24), dtype=jnp.float32)

    out2 = l1_loss(p2, g2)
    out2 = jax.block_until_ready(out2)

    a2c, b2c = _crop_to_identical_size(p2, g2)
    ref2 = jnp.mean(jnp.abs(a2c - b2c))
    assert jnp.allclose(out2, ref2, rtol=1e-5, atol=1e-6), (out2, ref2)

    print("KERNEL_OK")
</pallas_src>

<mosaic_0001>
module attributes {stable_mosaic.version = 11 : i64} {
  func.func @_l1_sum_kernel(%arg0: i32, %arg1: i32, %arg2: memref<40x128xf32, #tpu.memory_space<vmem>>, %arg3: memref<40x128xf32, #tpu.memory_space<vmem>>, %arg4: memref<8x128xf32, #tpu.memory_space<vmem>>) attributes {dimension_semantics = [#tpu.dimension_semantics<parallel>, #tpu.dimension_semantics<arbitrary>], iteration_bounds = array<i64: 1, 1>, scalar_prefetch = 0 : i64, scratch_operands = 0 : i64, tpu.core_type = #tpu.core_type<tc>, window_params = [{transform_indices = @transform_0, window_bounds = array<i64: 40, 128>}, {transform_indices = @transform_1, window_bounds = array<i64: 40, 128>}, {transform_indices = @transform_2, window_bounds = array<i64: 8, 128>}]} {
    %c0_i32 = arith.constant 0 : i32
    %0 = arith.cmpi eq, %arg1, %c0_i32 : i32
    %1 = arith.extui %0 : i1 to i32
    %c0_i32_0 = arith.constant 0 : i32
    %2 = arith.cmpi ne, %1, %c0_i32_0 : i32
    scf.if %2 {
      %cst_8 = arith.constant 0.000000e+00 : f32
      %12 = vector.broadcast %cst_8 : f32 to vector<8x128xf32>
      %c0_9 = arith.constant 0 : index
      %c0_10 = arith.constant 0 : index
      %13 = vector.load %arg4[%c0_9, %c0_10] : memref<8x128xf32, #tpu.memory_space<vmem>>, vector<8x128xf32>
      tpu.vector_store %arg4[%c0_9, %c0_10], %12 {strides = array<i32>} : memref<8x128xf32, #tpu.memory_space<vmem>>, vector<8x128xf32>,
    } else {
    }
    %c0 = arith.constant 0 : index
    %c0_1 = arith.constant 0 : index
    %3 = vector.load %arg2[%c0, %c0_1] : memref<40x128xf32, #tpu.memory_space<vmem>>, vector<40x128xf32>
    %c0_2 = arith.constant 0 : index
    %c0_3 = arith.constant 0 : index
    %4 = vector.load %arg3[%c0_2, %c0_3] : memref<40x128xf32, #tpu.memory_space<vmem>>, vector<40x128xf32>
    %5 = arith.subf %3, %4 : vector<40x128xf32>
    %6 = math.absf %5 : vector<40x128xf32>
    %c0_4 = arith.constant 0 : index
    %c0_5 = arith.constant 0 : index
    %7 = vector.load %arg4[%c0_4, %c0_5] : memref<8x128xf32, #tpu.memory_space<vmem>>, vector<8x128xf32>
    %8 = vector.shape_cast %6 : vector<40x128xf32> to vector<5x8x128xf32>
    %cst = arith.constant dense<0.000000e+00> : vector<8x128xf32>
    %9 = vector.multi_reduction <add>, %8, %cst [0] : vector<5x8x128xf32> to vector<8x128xf32>
    %10 = arith.addf %7, %9 : vector<8x128xf32>
    %c0_6 = arith.constant 0 : index
    %c0_7 = arith.constant 0 : index
    %11 = vector.load %arg4[%c0_6, %c0_7] : memref<8x128xf32, #tpu.memory_space<vmem>>, vector<8x128xf32>
    tpu.vector_store %arg4[%c0_6, %c0_7], %10 {strides = array<i32>} : memref<8x128xf32, #tpu.memory_space<vmem>>, vector<8x128xf32>,
    return
  }
  func.func @transform_0(%arg0: i32, %arg1: i32) -> (i32, i32) {
    %c1_i32 = arith.constant 1 : i32
    %0 = arith.muli %arg0, %c1_i32 : i32
    %1 = arith.addi %0, %arg1 : i32
    %c0_i32 = arith.constant 0 : i32
    %c0_i32_0 = arith.constant 0 : i32
    return %1, %c0_i32 : i32, i32
  }
  func.func @transform_1(%arg0: i32, %arg1: i32) -> (i32, i32) {
    %c1_i32 = arith.constant 1 : i32
    %0 = arith.muli %arg0, %c1_i32 : i32
    %1 = arith.addi %0, %arg1 : i32
    %c0_i32 = arith.constant 0 : i32
    %c0_i32_0 = arith.constant 0 : i32
    return %1, %c0_i32 : i32, i32
  }
  func.func @transform_2(%arg0: i32, %arg1: i32) -> (i32, i32) {
    %c0_i32 = arith.constant 0 : i32
    %c0_i32_0 = arith.constant 0 : i32
    return %arg0, %c0_i32 : i32, i32
  }
}

</mosaic_0001>

<bundles_post_ra>
// kernel: tpu_custom_call.1
= control target key start
LH: loop header
LB: loop body
LE: loop exit
PB: predicated region body
PF: predicated region fallthrough
CT: control target
= control target key end

     0   :  { %7 = vsyncpa [#allocation3], 0  ;;  %s219_s0 = inlined_call_operand.hbm [shape: f32[40,128], index: 0, kind: input, shape index: {}]   ;;  %s220_s1 = inlined_call_operand.hbm [shape: f32[40,128], index: 1, kind: input, shape index: {}]   ;;  %s221_s2 = inlined_call_operand.hbm [shape: f32[8,128], index: 2, kind: output, shape index: {}]  }
   0x1   :  { %8 = vsyncpa [#allocation6], 0 }
   0x2   :  { %9 = vsyncpa [#allocation4], 0  ;;  %s18_s11 = sshll.u32 %s219_s0, 4  ;;  %s190_s12 = smov [#allocation2]   ;;  %s19_s11 = int_to_ptr.hbm [resolvable:$true] %s18_s11 }
   0x3   :  { %s20_s13 = sshll.u32 %s190_s12, 4  ;;  %s35_s16 = sshll.u32 %s220_s1, 4  ;;  %s21_s13 = int_to_ptr.vmem [resolvable:$true] %s20_s13  ;;  %s36_s16 = int_to_ptr.hbm [resolvable:$true] %s35_s16 }
   0x4   :  { %s191_s17 = smov 128   ;;  %s192_s18 = smov 8  }
   0x5   :  { %26 = dma.hbm_to_vmem [thread:$0]  %s19_s11, 640, %s21_s13, [#allocation3], %s191_s17, %s191_s17, %s192_s18  }
   0x6   :  { %s193_s19 = smov [#allocation5]  }
   0x7   :  { %s37_s20 = sshll.u32 %s193_s19, 4  ;;  %s38_s20 = int_to_ptr.vmem [resolvable:$true] %s37_s20 }
   0x8   :  { %43 = dma.hbm_to_vmem [thread:$0]  %s36_s16, 640, %s38_s20, [#allocation6], %s191_s17, %s191_s17, %s192_s18  }
   0x9   :  { %184 = dma.done.wait [#allocation3], 640  }
   0xa   :  { %185 = vsyncadd [#allocation3], 4294966656 }
   0xb   :  { %186 = dma.done.wait [#allocation6], 640  }
   0xc   :  { %187 = vsyncadd [#allocation6], 4294966656  ;;  %v61_v0 = vld [vmem:[#allocation2] sm:$0xff]  ;;  %v62_v1 = vld [vmem:[#allocation2 + $0x8] sm:$0xff]  ;;  %s194_s0 = smov [#allocation7]   ;;  %s95_s23 = sshll.u32 %s221_s2, 4  ;;  %s96_s23 = int_to_ptr.hbm [resolvable:$true] %s95_s23 }
   0xd   :  { %v63_v2 = vld [vmem:[#allocation2 + $0x10] sm:$0xff]  ;;  %v64_v3 = vld [vmem:[#allocation2 + $0x18] sm:$0xff]  ;;  %v65_v4 = vld [vmem:[#allocation2 + $0x20] sm:$0xff]  ;;  %s93_s1 = sshll.u32 %s194_s0, 4  ;;  %s94_s1 = int_to_ptr.vmem [resolvable:$true] %s93_s1 }
   0xe   :  { %v66_v5 = vld [vmem:[#allocation5] sm:$0xff]  ;;  %v67_v6 = vld [vmem:[#allocation5 + $0x8] sm:$0xff]  ;;  %v68_v7 = vld [vmem:[#allocation5 + $0x10] sm:$0xff] }
   0xf   :  { %v69_v8 = vld [vmem:[#allocation5 + $0x18] sm:$0xff]  ;;  %v71_v9 = vsub.f32 %v61_v0, %v66_v5  ;;  %v70_v10 = vld [vmem:[#allocation5 + $0x20] sm:$0xff]  ;;  %v72_v11 = vsub.f32 %v62_v1, %v67_v6  ;;  %v73_v12 = vsub.f32 %v63_v2, %v68_v7 }
  0x10   :  { %v74_v13 = vsub.f32 %v64_v3, %v69_v8  ;;  %v75_v15 = vsub.f32 %v65_v4, %v70_v10 }
  0x11   :  { %v76_v14 = vand.u32 2147483647, %v71_v9  ;;  %v77_v16 = vand.u32 2147483647, %v72_v11  ;;  %v78_v17 = vand.u32 2147483647, %v73_v12 }
  0x12   :  { %v79_v18 = vand.u32 2147483647, %v74_v13  ;;  %v80_v20 = vand.u32 2147483647, %v75_v15 }
  0x13   :  { %v82_v19 = vadd.f32 %v77_v16, %v76_v14 }
  0x15   :  { %v83_v21 = vadd.f32 %v82_v19, %v78_v17 }
  0x17   :  { %v84_v22 = vadd.f32 %v83_v21, %v79_v18 }
  0x19   :  { %v85_v23 = vadd.f32 %v84_v22, %v80_v20 }
  0x1b   :  { %87 = vst [vmem:[#allocation7] sm:$0xff] %v85_v23 }
  0x1c   :  { %98 = dma.vmem_to_hbm [thread:$0]  %s94_s1, 128, %s96_s23, [#allocation4]  }
  0x1d   :  { %188 = dma.done.wait [#allocation4], 128  }
  0x1e   :  { %189 = vsyncadd [#allocation4], 4294967168 }
  0x1f   :  { %103 = vsyncpa [#allocation3], 1 }
  0x20   :  { %104 = vsyncpa [#allocation6], 1 }
  0x21   :  { %105 = vsyncpa [#allocation4], 1 }

</bundles_post_ra>
